<compile_context>
chip_gen: v6e
topology: v6e:2x2x1
jax: 0.10.0
libtpu: 0.0.40
codegen_flags: <defaults>
</compile_context>

<pallas_src>
import jax
import jax.numpy as jnp
from jax.experimental import pallas as pl
from jax.experimental.pallas import tpu as pltpu


def linear_kernel(x_ref, w_ref, b_ref, o_ref):
    """VPU-only linear layer.

    x_ref: (IN, B)  f32 VMEM  -- batch on the lane (last) axis.
    w_ref: (OUT*IN,) f32 SMEM -- PyTorch (OUT, IN) weight, flattened row-major.
    b_ref: (OUT,)   f32 SMEM.
    o_ref: (OUT, B) f32 VMEM  -- lane-dense output stores.
    """
    in_features = x_ref.shape[0]
    out_features = o_ref.shape[0]
    # Static (tiny) Python loops: fully unrolled at trace time.
    for o in range(out_features):
        acc = x_ref[0:1, :] * w_ref[o * in_features + 0]
        for i in range(1, in_features):
            acc = acc + x_ref[i:i + 1, :] * w_ref[o * in_features + i]
        o_ref[o:o + 1, :] = acc + b_ref[o]


def linear_pallas(x, weight, bias):
    """x: (B, IN) f32, weight: (OUT, IN) f32 (PyTorch layout), bias: (OUT,) f32."""
    B, IN = x.shape
    OUT = weight.shape[0]

    x_t = jnp.transpose(x)            # (IN, B): put batch on lanes (layout plumbing)
    w_flat = weight.reshape(-1)       # (OUT*IN,) -- free row-major reshape
    b_flat = bias.reshape(-1)         # (OUT,)

    out_t = pl.pallas_call(
        linear_kernel,
        out_shape=jax.ShapeDtypeStruct((OUT, B), x.dtype),
        in_specs=[
            pl.BlockSpec((IN, B), lambda: (0, 0)),                      # x in VMEM
            pl.BlockSpec(memory_space=pltpu.MemorySpace.SMEM),          # weight scalars
            pl.BlockSpec(memory_space=pltpu.MemorySpace.SMEM),          # bias scalars
        ],
        out_specs=pl.BlockSpec((OUT, B), lambda: (0, 0)),
    )(x_t, w_flat, b_flat)

    # (OUT, B) -> (B, OUT); for OUT == 1 this is a pure reshape (free).
    return jnp.transpose(out_t)


if __name__ == "__main__":
    key = jax.random.PRNGKey(0)
    kx, kw, kb = jax.random.split(key, 3)

    B, IN, OUT = 8, 2, 1

    # Deterministic parameter init (mimics nn.Linear's uniform(-1/sqrt(in), 1/sqrt(in)))
    bound = 1.0 / jnp.sqrt(jnp.float32(IN))
    weight = jax.random.uniform(kw, (OUT, IN), jnp.float32, -bound, bound)
    bias = jax.random.uniform(kb, (OUT,), jnp.float32, -bound, bound)

    x = jax.random.normal(kx, (B, IN), jnp.float32)

    out = linear_pallas(x, weight, bias)
    out = jax.block_until_ready(out)

    # Reference check in plain JAX
    ref = x @ weight.T + bias
    assert out.shape == (B, OUT), out.shape
    assert jnp.allclose(out, ref, atol=1e-5, rtol=1e-5)

    print("KERNEL_OK")
</pallas_src>

<mosaic_0001>
module attributes {stable_mosaic.version = 11 : i64} {
  func.func @linear_kernel(%arg0: memref<2x8xf32, #tpu.memory_space<vmem>>, %arg1: memref<2xf32, #tpu.memory_space<smem>>, %arg2: memref<1xf32, #tpu.memory_space<smem>>, %arg3: memref<1x8xf32, #tpu.memory_space<vmem>>) attributes {dimension_semantics = [], scalar_prefetch = 0 : i64, scratch_operands = 0 : i64, tpu.core_type = #tpu.core_type<tc>} {
    %c0 = arith.constant 0 : index
    %c0_0 = arith.constant 0 : index
    %0 = vector.load %arg0[%c0, %c0_0] : memref<2x8xf32, #tpu.memory_space<vmem>>, vector<1x8xf32>
    %c0_1 = arith.constant 0 : index
    %1 = memref.load %arg1[%c0_1] : memref<2xf32, #tpu.memory_space<smem>>
    %2 = vector.broadcast %1 : f32 to vector<1x8xf32>
    %3 = arith.mulf %0, %2 : vector<1x8xf32>
    %c1 = arith.constant 1 : index
    %c0_2 = arith.constant 0 : index
    %4 = vector.load %arg0[%c1, %c0_2] : memref<2x8xf32, #tpu.memory_space<vmem>>, vector<1x8xf32>
    %c1_3 = arith.constant 1 : index
    %5 = memref.load %arg1[%c1_3] : memref<2xf32, #tpu.memory_space<smem>>
    %6 = vector.broadcast %5 : f32 to vector<1x8xf32>
    %7 = arith.mulf %4, %6 : vector<1x8xf32>
    %8 = arith.addf %3, %7 : vector<1x8xf32>
    %c0_4 = arith.constant 0 : index
    %9 = memref.load %arg2[%c0_4] : memref<1xf32, #tpu.memory_space<smem>>
    %10 = vector.broadcast %9 : f32 to vector<1x8xf32>
    %11 = arith.addf %8, %10 : vector<1x8xf32>
    %c0_5 = arith.constant 0 : index
    %c0_6 = arith.constant 0 : index
    %12 = vector.load %arg3[%c0_5, %c0_6] : memref<1x8xf32, #tpu.memory_space<vmem>>, vector<1x8xf32>
    tpu.vector_store %arg3[%c0_5, %c0_6], %11 {strides = array<i32>} : memref<1x8xf32, #tpu.memory_space<vmem>>, vector<1x8xf32>,
    return
  }
}

</mosaic_0001>

<bundles_post_ra>
// kernel: tpu_custom_call.1
= control target key start
LH: loop header
LB: loop body
LE: loop exit
PB: predicated region body
PF: predicated region fallthrough
CT: control target
= control target key end

     0   :  { %9 = vsyncpa [#allocation5], 0  ;;  %s134_s0 = inlined_call_operand.vmem [shape: f32[2,8], index: 0, kind: input, shape index: {}]   ;;  %s135_s1 = inlined_call_operand.vmem [shape: f32[2], index: 1, kind: input, shape index: {}]   ;;  %s136_s2 = inlined_call_operand.<no memory space> [shape: f32[1], index: 2, kind: input, shape index: {}]   ;;  %s137_s3 = inlined_call_operand.hbm [shape: f32[1,8], index: 3, kind: output, shape index: {}]  }
   0x1   :  { %10 = vsyncpa [#allocation4], 0  ;;  %s19_s14 = sshll.u32 %s135_s1, 4  ;;  %s20_s14 = int_to_ptr.vmem [resolvable:$true] %s19_s14 }
   0x2   :  { %s61_s15 = scalar_lea.vmem %s20_s14, 16  ;;  %p66_p1 = scmp.lt.s32.totalorder %s20_s14, %s20_s14 }
   0x3   :  { %p62_p0 = scmp.ne.s32.totalorder %s20_s14, %s61_s15  ;;  %p67_p2 = scmp.lt.s32.totalorder %s61_s15, %s61_s15 }
   0x5   :  { %p68_p3 = por %p67_p2, %p66_p1 }
   0x7   :  { %p69_p4 = pnand %p68_p3, %p62_p0 }
   0x9   :  { %72 = shalt.err (!%p69_p4)
}
   0xa   :  { %s97_s16 = smov [#allocation3]  }
   0xb   :  { %22 = dma.vmem_to_smem %s20_s14, 16, %s97_s16, [#allocation5]  }
   0xc   :  { %93 = dma.done.wait [#allocation5], 16  }
   0xd   :  { %94 = vsyncadd [#allocation5], 4294967280 }
   0xe   :  { %28 = sfence }
   0xf   :  { %s30_s17 = sld [smem:[#allocation3]]  ;;  %v29_v0 = vld [vmem:[%s134_s0] sm:$0x1]  ;;  %v33_v1 = vld [vmem:[%s134_s0 + $0x1] sm:$0x1]  ;;  %v39_v6 = vstv %s136_s2  ;;  %s98_s24 = smov [#allocation6]  }
  0x10   :  { %s58_s18 = sld [smem:[#allocation3 + $0x1]]  ;;  %s49_s25 = sshll.u32 %s98_s24, 4  ;;  %vm41_vm0 = vcmask 57344   ;;  %s50_s25 = int_to_ptr.vmem [resolvable:$true] %s49_s25 }
  0x11   :  { %s73_s26 = scalar_lea.vmem %s50_s25, 16  ;;  %s77_s27 = scalar_lea.vmem %s50_s25, 32 }
  0x12   :  { %p74_p5 = scmp.ne.s32.totalorder %s50_s25, %s73_s26  ;;  %p78_p6 = scmp.lt.s32.totalorder %s50_s25, %s50_s25 }
  0x13   :  { %p79_p7 = scmp.lt.s32.totalorder %s77_s27, %s73_s26 }
  0x15   :  { %v31_v2 = vstv %s30_s17  ;;  %p80_p8 = por %p79_p7, %p78_p6 }
  0x16   :  { %v32_v3 = vmul.f32 %v31_v2, %v29_v0  ;;  %v35_v4 = vstv %s58_s18 }
  0x17   :  { %v36_v5 = vmul.f32 %v35_v4, %v33_v1  ;;  %p81_p9 = pnand %p80_p8, %p74_p5 }
  0x19   :  { %v37_v7 = vadd.f32 %v36_v5, %v32_v3 }
  0x1b   :  { %v40_v8 = vadd.f32 %v39_v6, %v37_v7 }
  0x1d   :  { %42 = vst.msk [vmem:[#allocation6] sm:$0x1] %vm41_vm0, %v40_v8 }
  0x1e   :  { %84 = shalt.err (!%p81_p9)
}
  0x1f   :  { %52 = dma.vmem_to_hbm [thread:$0]  %s50_s25, 16, %s137_s3, [#allocation4]  }
  0x20   :  { %95 = dma.done.wait [#allocation4], 16  }
  0x21   :  { %96 = vsyncadd [#allocation4], 4294967280 }
  0x22   :  { %56 = vsyncpa [#allocation4], 1 }
  0x23   :  { %57 = vsyncpa [#allocation5], 1 }

</bundles_post_ra>
